<compile_context>
chip_gen: v7x
topology: tpu7x:2x2x1
jax: 0.10.0
libtpu: 0.0.40
codegen_flags: <defaults>
</compile_context>

<pallas_src>
import functools

import jax
import jax.numpy as jnp
from jax.experimental import pallas as pl
from jax.experimental.pallas import tpu as pltpu


def _mask_kernel(seed_ref, o_ref, *, threshold, tile_rows, n_cols):
    """Write one Bernoulli(p) mask tile using a counter-based hash PRNG."""
    i = pl.program_id(0)
    shape = o_ref.shape  # (tile_rows, n_cols)

    # Global element index, unique across the whole (M, N) array, so the
    # realized mask does not depend on the tile size / grid shape.
    row = jax.lax.broadcasted_iota(jnp.int32, shape, 0) + i * tile_rows
    col = jax.lax.broadcasted_iota(jnp.int32, shape, 1)
    idx = row.astype(jnp.uint32) * jnp.uint32(n_cols) + col.astype(jnp.uint32)

    # Mix the seed into the counter, then apply the lowbias32 integer
    # finalizer (2 multiplies + 3 xor-shifts, all VPU int ops).
    z = idx + seed_ref[0].astype(jnp.uint32) * jnp.uint32(0x9E3779B9)
    z = z ^ (z >> jnp.uint32(16))
    z = z * jnp.uint32(0x7FEB352D)
    z = z ^ (z >> jnp.uint32(15))
    z = z * jnp.uint32(0x846CA68B)
    z = z ^ (z >> jnp.uint32(16))

    # Bernoulli(p): single integer compare against uint32(round(p * 2^32)).
    o_ref[...] = (z < jnp.uint32(threshold)).astype(o_ref.dtype)


def _choose_tile_rows(m, n, itemsize, *, max_tile_bytes=8 << 20):
    """Largest multiple-of-8 row count that divides m, keeps one (full-width,
    lane-dense) output tile under ~8 MiB (so double-buffering fits v7x's
    scoped VMEM), and keeps >= 2 grid steps when possible so both v7x
    TensorCores get work via the 'parallel' grid axis."""
    max_rows = max(8, max_tile_bytes // (n * itemsize))
    best = 8
    for tm in range(8, m + 1, 8):
        if m % tm == 0 and tm <= max_rows:
            best = tm
    if m // best < 2:  # keep the row axis in the grid (megacore) if we can
        for tm in range(best - 8, 7, -8):
            if m % tm == 0 and m // tm >= 2:
                best = tm
                break
    return best


def mask_generator(x, p, seed=0):
    """Pallas equivalent of MaskGenerator(p).forward(x) for 2-D tabular x."""
    M, N = x.shape
    assert M % 8 == 0 and N % 128 == 0, "pad x to (8, 128) multiples for this demo"

    itemsize = jnp.dtype(x.dtype).itemsize
    tm = _choose_tile_rows(M, N, itemsize)
    grid = (M // tm,)

    # uint32 threshold for the integer Bernoulli compare; clamp so p ~ 1.0
    # does not overflow to 0 (residual bias <= 2^-32, negligible).
    threshold = int(round(float(p) * 4294967296.0))
    threshold = max(0, min(threshold, 4294967295))

    seed_arr = jnp.asarray([seed], dtype=jnp.int32)
    kernel = functools.partial(
        _mask_kernel, threshold=threshold, tile_rows=tm, n_cols=N)

    # TODO(synk): downstream could fuse the mask application (x * mask) here
    # or emit a narrower dtype to halve write bytes; kept x.dtype to match the
    # PyTorch module's return dtype exactly.
    return pl.pallas_call(
        kernel,
        out_shape=jax.ShapeDtypeStruct((M, N), x.dtype),
        grid_spec=pltpu.PrefetchScalarGridSpec(
            num_scalar_prefetch=1,
            grid=grid,
            in_specs=[],  # no tensor inputs: the dead x read is eliminated
            out_specs=pl.BlockSpec((tm, N), lambda i, seed: (i, 0)),
        ),
        compiler_params=pltpu.CompilerParams(
            dimension_semantics=("parallel",),
        ),
        cost_estimate=pl.CostEstimate(
            flops=10 * M * N,                  # integer hash ops, tiny
            transcendentals=0,
            bytes_accessed=M * N * itemsize,   # write-only kernel
        ),
    )(seed_arr)


if __name__ == "__main__":
    key = jax.random.PRNGKey(0)
    # Small tabular batch: 16 rows, 256 features (VIME operates on tabular data).
    x = jax.random.normal(key, (16, 256), dtype=jnp.float32)
    p = 0.3

    mask = mask_generator(x, p, seed=0)
    mask = jax.block_until_ready(mask)

    # Sanity checks: binary values, right shape/dtype, empirical rate near p.
    assert mask.shape == x.shape and mask.dtype == x.dtype
    vals = jnp.unique(mask)
    assert bool(jnp.all((vals == 0.0) | (vals == 1.0)))
    emp_rate = float(jnp.mean(mask))
    assert abs(emp_rate - p) < 0.15, f"empirical rate {emp_rate} too far from p={p}"

    # Determinism across calls with the same seed.
    mask2 = jax.block_until_ready(mask_generator(x, p, seed=0))
    assert bool(jnp.all(mask == mask2))

    print("KERNEL_OK")
</pallas_src>

<mosaic_0001>
module attributes {stable_mosaic.version = 11 : i64} {
  func.func @_mask_kernel(%arg0: i32, %arg1: memref<1xi32, #tpu.memory_space<smem>>, %arg2: memref<8x256xf32, #tpu.memory_space<vmem>>) attributes {dimension_semantics = [#tpu.dimension_semantics<parallel>], iteration_bounds = array<i64: 2>, scalar_prefetch = 1 : i64, scratch_operands = 0 : i64, tpu.core_type = #tpu.core_type<tc>, window_params = [{transform_indices = @transform_0, window_bounds = array<i64: 8, 256>}]} {
    %0 = tpu.iota {dimensions = array<i32: 0>} : vector<8x256xi32>
    %c8_i32 = arith.constant 8 : i32
    %1 = arith.muli %arg0, %c8_i32 : i32
    %2 = vector.broadcast %1 : i32 to vector<8x256xi32>
    %3 = arith.addi %0, %2 : vector<8x256xi32>
    %4 = tpu.iota {dimensions = array<i32: 1>} : vector<8x256xi32>
    %c256_i32 = arith.constant 256 : i32
    %5 = vector.broadcast %c256_i32 : i32 to vector<8x256xi32>
    %6 = arith.muli %3, %5 : vector<8x256xi32>
    %7 = arith.addi %6, %4 : vector<8x256xi32>
    %c0 = arith.constant 0 : index
    %8 = memref.load %arg1[%c0] : memref<1xi32, #tpu.memory_space<smem>>
    %c-1640531527_i32 = arith.constant -1640531527 : i32
    %9 = arith.muli %8, %c-1640531527_i32 : i32
    %10 = vector.broadcast %9 : i32 to vector<8x256xi32>
    %11 = arith.addi %7, %10 : vector<8x256xi32>
    %c16_i32 = arith.constant 16 : i32
    %12 = vector.broadcast %c16_i32 : i32 to vector<8x256xi32>
    %13 = arith.shrui %11, %12 : vector<8x256xi32>
    %14 = arith.xori %11, %13 : vector<8x256xi32>
    %c2146121005_i32 = arith.constant 2146121005 : i32
    %15 = vector.broadcast %c2146121005_i32 : i32 to vector<8x256xi32>
    %16 = arith.muli %14, %15 : vector<8x256xi32>
    %c15_i32 = arith.constant 15 : i32
    %17 = vector.broadcast %c15_i32 : i32 to vector<8x256xi32>
    %18 = arith.shrui %16, %17 : vector<8x256xi32>
    %19 = arith.xori %16, %18 : vector<8x256xi32>
    %c-2073254261_i32 = arith.constant -2073254261 : i32
    %20 = vector.broadcast %c-2073254261_i32 : i32 to vector<8x256xi32>
    %21 = arith.muli %19, %20 : vector<8x256xi32>
    %c16_i32_0 = arith.constant 16 : i32
    %22 = vector.broadcast %c16_i32_0 : i32 to vector<8x256xi32>
    %23 = arith.shrui %21, %22 : vector<8x256xi32>
    %24 = arith.xori %21, %23 : vector<8x256xi32>
    %c1288490189_i32 = arith.constant 1288490189 : i32
    %25 = vector.broadcast %c1288490189_i32 : i32 to vector<8x256xi32>
    %26 = arith.cmpi ult, %24, %25 : vector<8x256xi32>
    %27 = arith.extui %26 : vector<8x256xi1> to vector<8x256xi32>
    %28 = arith.sitofp %27 : vector<8x256xi32> to vector<8x256xf32>
    %c0_1 = arith.constant 0 : index
    %c0_2 = arith.constant 0 : index
    %29 = vector.load %arg2[%c0_1, %c0_2] : memref<8x256xf32, #tpu.memory_space<vmem>>, vector<8x256xf32>
    tpu.vector_store %arg2[%c0_1, %c0_2], %28 {strides = array<i32>} : memref<8x256xf32, #tpu.memory_space<vmem>>, vector<8x256xf32>,
    return
  }
  func.func @transform_0(%arg0: i32, %arg1: memref<1xi32, #tpu.memory_space<smem>>) -> (i32, i32) {
    %c0_i32 = arith.constant 0 : i32
    %c0_i32_0 = arith.constant 0 : i32
    return %arg0, %c0_i32 : i32, i32
  }
}

</mosaic_0001>

<bundles_post_ra>
// kernel: tpu_custom_call.1
= control target key start
LH: loop header
LB: loop body
LE: loop exit
PB: predicated region body
PF: predicated region fallthrough
CT: control target
= control target key end

     0   :  { %s344_s0 = inlined_call_operand.<no memory space> [shape: s32[1], index: 0, kind: input, shape index: {}]   ;;  %s345_s1 = inlined_call_operand.hbm [shape: f32[16,256], index: 1, kind: output, shape index: {}]  }
   0x1   :  { %6 = sst [smem:[#allocation3]] %s344_s0 }
   0x2   :  { %7 = vsyncpa [#allocation5], 0 }
   0x3   :  { %9 = vsyncpa [#allocation5 + $0x1], 0  ;;  %s262_s8 = smov 0   ;;  %s264_s9 = smov 0  }
   0x4   :  { %s266_s10 = smov 0  }
   0x5 LB: > { %s146_s0 = sadd.s32 4294967295, %s245_s10   ;;  %s279_s11 = sadd.s32 1, %s245_s10   ;;  %s245_s10 = sphi %s266_s10, %s350_s10   ;;  %s241_s9 = sphi %s264_s9, %s349_s9   ;;  %s237_s8 = sphi %s262_s8, %s348_s8  }
   0x6   : > { %s18_s12 = ssub.s32 %s245_s10, %s279_s11  ;;  %s21_s13 = sadd.s32 1, %s241_s9 }
   0x7   : > { %p19_p0 = scmp.eq.s32.totalorder %s18_s12, 0  ;;  %p147_p1 = scmp.ne.s32.totalorder %s18_s12, 0 }
   0x8   : > { %p25_p2 = scmp.eq.s32.totalorder %s245_s10, 1  ;;  %p30_p3 = scmp.ne.s32.totalorder %s241_s9, %s237_s8 }
   0x9   : > { %s288_s14 = scalar_select %p19_p0, %s241_s9, %s21_s13  }
   0xa   : > { %p290_p4 = por %p147_p1, %p25_p2  ;;  %p31_p5 = scmp.eq.s32.totalorder %s146_s0, 1 }
   0xb   : > { %p148_p7 = scmp.ge.s32.totalorder %s245_s10, 2 }
   0xc   : > { %p294_p6 = por %p31_p5, %p30_p3  ;;  %v48_v0 = vlaneseq (!%p148_p7)  ;;  %s150_s17 = sshll.u32 (!%p148_p7), %s245_s10, 3  ;;  %v247_v28 = vmov (!%p148_p7), 0.0  }
   0xd   : > { %40 = sbr.rel (%p148_p7) target bundleno = 56 (0x38), region = 12  ;;  %v51_v1 = vstv (!%p148_p7), %s150_s17  ;;  %s59_s18 = sld [smem:[#allocation3]] (!%p148_p7) }
   0xe   : > { %v49_v2 = vshrl.u32 (!%p148_p7), %v48_v0, 7  ;;  %v54_v3 = vand.u32 (!%p148_p7), 127, %v48_v0  ;;  %s45_s20 = sand.u32 (!%p148_p7), 1, %s241_s9   ;;  %s158_s24 = sshll.u32 (!%p148_p7), %s245_s10, 8 }
   0xf   : > { %s149_s21 = sshll.u32 (!%p148_p7), %s45_s20, 4  ;;  %s307_s27 = scalar_lea.hbm (!%p148_p7), %s345_s1, %s158_s24 }
  0x10   : > { %v52_v4 = vadd.s32 (!%p148_p7), %v51_v1, %v49_v2  ;;  %v55_v5 = vadd.s32 (!%p148_p7), 128, %v54_v3  ;;  %s47_s22 = scalar_lea.vmem (!%p148_p7), [#allocation4], %s149_s21  ;;  %s89_s28 = scalar_lea.sflag (!%p148_p7), [#allocation5], %s45_s20 }
  0x11   : > { %s103_s23 = sshll.u32 (!%p148_p7), %s47_s22, 4  ;;  %s248_s30 = smov (!%p148_p7), [#allocation4]   ;;  %s302_s23 = int_to_ptr.vmem [resolvable:$true] %s103_s23 }
  0x12   : > { %v56_v6 = vmul.u32 (!%p148_p7), 256, %v52_v4  ;;  %s191_s29 = scalar_lea.vmem (!%p148_p7), %s302_s23, 256  ;;  %s195_s2 = sshll.u32 (!%p148_p7), %s248_s30, 4  ;;  %s196_s2 = int_to_ptr.vmem [resolvable:$false] %s195_s2 }
  0x13   : > { %s60_s19 = smul.u32 (!%p148_p7), 2654435769, %s59_s18  ;;  %p192_p8 = scmp.ne.s32.totalorder (!%p148_p7), %s302_s23, %s191_s29 }
  0x14   : > { %v57_v7 = vadd.s32 %v56_v6, %v54_v3  ;;  %v58_v8 = vadd.s32 %v56_v6, %v55_v5  ;;  %s197_s3 = scalar_lea.vmem %s196_s2, 512  ;;  %p198_p11 = scmp.lt.s32.totalorder %s302_s23, %s196_s2 }
  0x15   : > { %v61_v9 = vstv %s60_s19  ;;  %p193_p9 = pnand %p192_p8, %p290_p4  ;;  %p199_p12 = scmp.lt.s32.totalorder %s197_s3, %s191_s29 }
  0x16   : > { %v62_v10 = vadd.s32 %v61_v9, %v57_v7  ;;  %v63_v11 = vadd.s32 %v61_v9, %v58_v8 }
  0x17   : > { %p194_p10 = pneg %p193_p9  ;;  %p200_p13 = por %p199_p12, %p198_p11 }
  0x18   : > { %v64_v12 = vshrl.u32 %v62_v10, 16  ;;  %v65_v13 = vshrl.u32 %v63_v11, 16 }
  0x19   : > { %p201_p0 = pnand %p200_p13, %p194_p10 }
  0x1a   : > { %v66_v14 = vxor.u32 %v64_v12, %v62_v10  ;;  %v67_v15 = vxor.u32 %v65_v13, %v63_v11 }
  0x1c   : > { %v68_v16 = vmul.u32 2146121005, %v66_v14  ;;  %v69_v17 = vmul.u32 2146121005, %v67_v15 }
  0x1e   : > { %v70_v18 = vshrl.u32 %v68_v16, 15  ;;  %v71_v19 = vshrl.u32 %v69_v17, 15 }
  0x20   : > { %v72_v20 = vxor.u32 %v70_v18, %v68_v16  ;;  %v73_v21 = vxor.u32 %v71_v19, %v69_v17 }
  0x22   : > { %v74_v22 = vmul.u32 2221713035, %v72_v20  ;;  %v75_v23 = vmul.u32 2221713035, %v73_v21 }
  0x24   : > { %v76_v24 = vshrl.u32 %v74_v22, 16  ;;  %v77_v25 = vshrl.u32 %v75_v23, 16 }
  0x26   : > { %v78_v26 = vxor.u32 %v76_v24, %v74_v22  ;;  %v79_v27 = vxor.u32 %v77_v25, %v75_v23 }
  0x28   : > { %vm80_vm0 = vcmp.lt.u32.totalorder %v78_v26, 1288490189  ;;  %vm81_vm1 = vcmp.lt.u32.totalorder %v79_v27, 1288490189 }
  0x29   : > { %v151_v29 = vsel %vm80_vm0, 1.0, %v247_v28  ;;  %v152_v30 = vsel %vm81_vm1, 1.0, %v247_v28 }
  0x2a   : > { %86 = vst [vmem:[%s47_s22] sm:$0xff] %v151_v29  ;;  %87 = vst [vmem:[%s47_s22 + $0x8] sm:$0xff] %v152_v30 }
  0x2b   : > { %204 = shalt.err (!%p201_p0)
}
  0x2c   : > { %s205_s4 = scalar_lea.hbm %s307_s27, 256  ;;  %s209_s7 = scalar_lea.hbm %s345_s1, 512 }
  0x2d   : > { %p206_p1 = scmp.ne.s32.totalorder %s307_s27, %s205_s4  ;;  %p210_p5 = scmp.lt.u32.totalorder %s307_s27, %s345_s1 }
  0x2e   : > { %p211_p7 = scmp.lt.u32.totalorder %s209_s7, %s205_s4  ;;  %p213_p9 = scmp.lt.u32.totalorder %s205_s4, %s307_s27 }
  0x2f   : > { %p207_p2 = pnand %p206_p1, %p290_p4 }
  0x30   : > { %p212_p8 = por %p211_p7, %p210_p5 }
  0x31   : > { %p208_p3 = pneg %p207_p2 }
  0x32   : > { %p214_p10 = por %p213_p9, %p212_p8 }
  0x34   : > { %p215_p11 = pnand %p214_p10, %p208_p3 }
  0x36   : > { %218 = shalt.err (!%p215_p11)
}
  0x37   : > { %159 = dma.vmem_to_hbm [thread:$0]  (%p290_p4), %s302_s23, 256, %s307_s27, %s89_s28  }
  0x38 PF: > { %p165_p12 = scmp.ge.s32.totalorder %s245_s10, 1  ;;  %s115_s13 = sand.u32 1, %s237_s8  }
  0x39   : > { %s116_s17 = scalar_lea.sflag [#allocation5], %s115_s13 }
  0x3a   : > { %p162_p13 = pnand %p165_p12, %p294_p6 }
  0x3c   : > { %232 = dma.done.wait (!%p162_p13), %s116_s17, 256  }
  0x3d   : > { %234 = vsyncadd (!%p162_p13), %s116_s17, 4294967040  ;;  %p12_p0 = scmp.ge.s32.totalorder %s279_s11, 3   ;;  %s348_s8 = smov %s241_s9 }
  0x3e   : > { %s349_s9 = smov %s288_s14  ;;  %s350_s10 = smov %s279_s11 }
  0x3f   :  { %14 = sbr.rel (!%p12_p0) target bundleno = 5 (0x5), region = 44 }
  0x46   :  { %121 = vsyncpa [#allocation5], 1 }
  0x47   :  { %123 = vsyncpa [#allocation5 + $0x1], 1 }

</bundles_post_ra>
